<compile_context>
chip_gen: v7x
topology: tpu7x:2x2x1
jax: 0.10.0
libtpu: 0.0.40
codegen_flags: <defaults>
</compile_context>

<pallas_src>
import numpy as np
import jax
import jax.numpy as jnp
from jax.experimental import pallas as pl
from jax.experimental.pallas import tpu as pltpu


def _round_up(x, m):
    return (x + m - 1) // m * m


def _cdiv(a, b):
    return -(-a // b)


def _conv3x3s2_kernel(x_ref, w_ref, b_ref, o_ref):
    """One Encoder-block row tile: out = relu(X @ W + b), one MXU dot.

    x_ref: (M, ks)  bf16  -- 9-tap stride-2 patch rows, ks = 9*C_in (no K padding)
    w_ref: (ks, Cp) bf16  -- 3x3 kernel flattened (kh,kw,ci), zero-padded to Cp
    b_ref: (1, Cp)  f32   -- bias, zero-padded to Cp
    o_ref: (M, Cp)  bf16  -- Cp multiple of 128 -> lane-dense, unmasked stores
    """
    acc = jnp.dot(x_ref[...], w_ref[...], preferred_element_type=jnp.float32)
    acc = acc + b_ref[...]
    o_ref[...] = jnp.maximum(acc, 0.0).astype(o_ref.dtype)


def _vmem_capacity_bytes():
    """Per-core VMEM capacity; falls back to the v7x (smallest) value."""
    try:
        info = pltpu.get_tpu_info()
        cap = int(getattr(info, "vmem_capacity_bytes", 0))
        if cap > 0:
            return cap
    except Exception:
        pass
    return 64 * 2**20


def _budgets():
    """(row-tile VMEM budget, vmem_limit cap) per TPU generation."""
    cap = _vmem_capacity_bytes()
    if cap >= 100 * 2**20:              # v5e / v6e: 128 MiB physical VMEM
        return 28 * 2**20, 96 * 2**20
    return 14 * 2**20, 48 * 2**20       # v7x: 64 MiB per TC -> leave headroom


def _pick_row_tile(ho, wo_pad, ks, cp, n_imgs, tile_budget):
    """Output-row tile height TH with lane-padding-aware VMEM accounting."""
    ks_l = _round_up(ks, 128)                    # (M, ks) bf16 occupies ks_l lanes
    row_bytes = wo_pad * (ks_l + cp) * 2         # bf16 input row + bf16 output row
    th = max(1, min(ho, tile_budget // max(1, 2 * row_bytes)))   # double-buffered
    n_t = _cdiv(ho, th)
    # Expose >= 2 programs (v7x has two TensorCores) ...
    if n_imgs * n_t < 2 and ho >= 2:
        th = _cdiv(ho, 2)
        n_t = _cdiv(ho, th)
    # ... and prefer an even total program count so the two TCs split evenly.
    if (n_imgs * n_t) % 2 == 1 and n_t < ho:
        th = _cdiv(ho, n_t + 1)
    return int(th)


def conv3x3_s2_relu(x_nhwc, w_hwio, bias):
    """One Encoder block: Conv2d(k=3, s=2, p=1, bias) + ReLU as a Pallas GEMM.

    x_nhwc : (N, H, W, C_in)      bf16 (layer chain dtype)
    w_hwio : (3, 3, C_in, C_out)  f32
    bias   : (C_out,)             f32
    returns: (N, Ho, Wo, C_out)   bf16, NHWC
    """
    n, h, w, c = x_nhwc.shape
    c_out = w_hwio.shape[-1]
    ho = (h - 1) // 2 + 1
    wo = (w - 1) // 2 + 1
    wo_pad = _round_up(wo, 16)          # bf16-tile aligned output line length
    ks = 9 * c                          # (kh, kw, ci) -- exact K, no zeros
    cp = _round_up(c_out, 128)          # lane-dense output channels

    # ---- layout glue (plain XLA), all bf16:
    #   prep[n, p, j, (kh, kw, ci)] = xpad[n, 2p+kh, 2j+kw, ci]
    # stride-2 9-tap "im2col" is only ~2.25x input bytes and needs no halo /
    # overlapping tiles, so the Pallas grid pipelines it with plain BlockSpecs.
    xb = x_nhwc.astype(jnp.bfloat16)
    xp = jnp.pad(xb, ((0, 0), (1, 2 * ho - h), (1, 2 * wo - w), (0, 0)))
    taps = []
    for kh in (0, 1, 2):
        for kw in (0, 1, 2):
            taps.append(jax.lax.slice(
                xp, (0, kh, kw, 0),
                (n, kh + 2 * (ho - 1) + 1, kw + 2 * (wo - 1) + 1, c),
                (1, 2, 2, 1)))                         # (n, ho, wo, c)
    prep = jnp.concatenate(taps, axis=-1)              # (n, ho, wo, 9c) bf16

    tile_budget, vmem_cap = _budgets()
    th = _pick_row_tile(ho, wo_pad, ks, cp, n, tile_budget)
    n_t = _cdiv(ho, th)
    ho_pad = n_t * th
    prep = jnp.pad(prep, ((0, 0), (0, ho_pad - ho), (0, wo_pad - wo), (0, 0)))
    m = th * wo_pad
    xin = prep.reshape(n * n_t, m, ks)   # contiguous -> pure metadata reshape

    # Weight / bias, zero-padded along C_out to the lane-dense width.
    # reshape(9c, c_out) of (kh, kw, ci, co) matches the tap concat order.
    wflat = jnp.pad(w_hwio.reshape(ks, c_out),
                    ((0, 0), (0, cp - c_out))).astype(jnp.bfloat16)
    bpad = jnp.pad(bias, (0, cp - c_out)).reshape(1, cp).astype(jnp.float32)

    # VMEM limit with lane-padding-aware accounting (critical for small C_in).
    in_blk = m * _round_up(ks, 128) * 2
    out_blk = m * cp * 2
    w_blk = _round_up(ks, 16) * cp * 2
    blk_bytes = 2 * (in_blk + out_blk) + 2 * w_blk + 2 * 8 * cp * 4
    vmem_limit = int(min(vmem_cap, max(32 * 2**20, 2 * blk_bytes)))

    flops = 2 * (n * n_t) * m * ks * cp
    bytes_accessed = int(xin.size * 2 + wflat.size * 2 + bpad.size * 4
                         + (n * n_t) * m * cp * 2)

    out = pl.pallas_call(
        _conv3x3s2_kernel,
        out_shape=jax.ShapeDtypeStruct((n * n_t, m, cp), jnp.bfloat16),
        grid=(n * n_t,),
        in_specs=[
            pl.BlockSpec((None, m, ks), lambda i: (i, 0, 0)),
            pl.BlockSpec((ks, cp), lambda i: (0, 0)),
            pl.BlockSpec((1, cp), lambda i: (0, 0)),
        ],
        out_specs=pl.BlockSpec((None, m, cp), lambda i: (i, 0, 0)),
        compiler_params=pltpu.CompilerParams(
            dimension_semantics=("parallel",),
            vmem_limit_bytes=vmem_limit),
        cost_estimate=pl.CostEstimate(flops=flops, transcendentals=0,
                                      bytes_accessed=bytes_accessed),
    )(xin, wflat, bpad)

    out = out.reshape(n, ho_pad, wo_pad, cp)[:, :ho, :wo, :c_out]
    return out                                          # NHWC, bf16, true C_out


class EncoderPallas:
    """Pallas port of iPERCore lwb_softgate_resunet.Encoder."""

    def __init__(self, in_channel, num_filters, use_bias=True, key=None):
        self.n_down = len(num_filters)
        self.use_bias = use_bias
        if key is None:
            key = jax.random.PRNGKey(42)
        self.weights, self.biases = [], []
        c_prev = in_channel
        for c_out in num_filters:
            key, wk, bk = jax.random.split(key, 3)
            fan_in = c_prev * 9
            bound = 1.0 / np.sqrt(fan_in)
            # PyTorch Conv2d weight is (C_out, C_in, 3, 3); stored as (3, 3, C_in, C_out).
            w = jax.random.uniform(wk, (3, 3, c_prev, c_out), jnp.float32, -bound, bound)
            b = (jax.random.uniform(bk, (c_out,), jnp.float32, -bound, bound)
                 if use_bias else jnp.zeros((c_out,), jnp.float32))
            self.weights.append(w)
            self.biases.append(b)
            c_prev = c_out

    def __call__(self, x_nchw, get_details=True):
        # NCHW + f32 only at the API boundary (PyTorch convention).  The layer
        # chain stays NHWC bf16, halving every intermediate HBM pass.
        x = jnp.transpose(x_nchw, (0, 2, 3, 1)).astype(jnp.bfloat16)
        x_list = []
        for i in range(self.n_down):
            x = conv3x3_s2_relu(x, self.weights[i], self.biases[i])
            x_list.append(jnp.transpose(x, (0, 3, 1, 2)).astype(jnp.float32))
        return x_list if get_details else x_list[-1]


def _reference(x_nchw, enc):
    """Pure-JAX reference (lax conv, f32) for correctness checking."""
    x = x_nchw
    outs = []
    for w, b in zip(enc.weights, enc.biases):
        w_oihw = jnp.transpose(w, (3, 2, 0, 1))
        y = jax.lax.conv_general_dilated(
            x, w_oihw, window_strides=(2, 2), padding=((1, 1), (1, 1)),
            dimension_numbers=("NCHW", "OIHW", "NCHW"))
        y = jnp.maximum(y + b.reshape(1, -1, 1, 1), 0.0)
        outs.append(y)
        x = y
    return outs


if __name__ == "__main__":
    in_channel = 4
    num_filters = [8, 16]
    n, h, w = 2, 16, 16

    x = jax.random.normal(jax.random.PRNGKey(0), (n, in_channel, h, w),
                          dtype=jnp.float32)
    enc = EncoderPallas(in_channel, num_filters, use_bias=True,
                        key=jax.random.PRNGKey(1))

    fwd = jax.jit(lambda xx: enc(xx, get_details=True))
    outs = fwd(x)
    outs = [jax.block_until_ready(o) for o in outs]

    refs = _reference(x, enc)
    assert len(outs) == len(num_filters)
    expected_hw = h
    for i, (o, r) in enumerate(zip(outs, refs)):
        expected_hw //= 2
        assert o.shape == (n, num_filters[i], expected_hw, expected_hw), o.shape
        assert o.dtype == jnp.float32, o.dtype
        # bf16 activations/weights through the chain (f32 accumulation) ->
        # slightly loosened tolerance vs. the f32 reference.
        np.testing.assert_allclose(np.asarray(o), np.asarray(r),
                                   rtol=2e-2, atol=3e-2)

    print("KERNEL_OK")
</pallas_src>

<mosaic_0001>
module attributes {stable_mosaic.version = 11 : i64} {
  func.func @_conv3x3s2_kernel(%arg0: i32, %arg1: memref<1x128x36xbf16, #tpu.memory_space<vmem>>, %arg2: memref<36x128xbf16, #tpu.memory_space<vmem>>, %arg3: memref<1x128xf32, #tpu.memory_space<vmem>>, %arg4: memref<1x128x128xbf16, #tpu.memory_space<vmem>>) attributes {dimension_semantics = [#tpu.dimension_semantics<parallel>], iteration_bounds = array<i64: 2>, scalar_prefetch = 0 : i64, scratch_operands = 0 : i64, tpu.core_type = #tpu.core_type<tc>, window_params = [{transform_indices = @transform_0, window_bounds = array<i64: 1, 128, 36>}, {pipeline_mode = #tpu.pipeline_mode<synchronous>, transform_indices = @transform_1, window_bounds = array<i64: 36, 128>}, {pipeline_mode = #tpu.pipeline_mode<synchronous>, transform_indices = @transform_2, window_bounds = array<i64: 1, 128>}, {transform_indices = @transform_3, window_bounds = array<i64: 1, 128, 128>}]} {
    %c0 = arith.constant 0 : index
    %c0_0 = arith.constant 0 : index
    %c0_1 = arith.constant 0 : index
    %0 = vector.load %arg1[%c0, %c0_0, %c0_1] : memref<1x128x36xbf16, #tpu.memory_space<vmem>>, vector<1x128x36xbf16>
    %1 = vector.shape_cast %0 : vector<1x128x36xbf16> to vector<128x36xbf16>
    %c0_2 = arith.constant 0 : index
    %c0_3 = arith.constant 0 : index
    %2 = vector.load %arg2[%c0_2, %c0_3] : memref<36x128xbf16, #tpu.memory_space<vmem>>, vector<36x128xbf16>
    %cst = arith.constant dense<0.000000e+00> : vector<128x128xf32>
    %3 = tpu.matmul %1, %2, %cst {dimension_numbers = #tpu.dot_dimension_numbers<[1], [0], [0], [1], [0, 0, 1, 1], [], []>} : vector<128x36xbf16>, vector<36x128xbf16>, vector<128x128xf32> -> vector<128x128xf32>
    %c0_4 = arith.constant 0 : index
    %c0_5 = arith.constant 0 : index
    %4 = vector.load %arg3[%c0_4, %c0_5] : memref<1x128xf32, #tpu.memory_space<vmem>>, vector<1x128xf32>
    %5 = vector.broadcast %4 : vector<1x128xf32> to vector<128x128xf32>
    %6 = arith.addf %3, %5 : vector<128x128xf32>
    %cst_6 = arith.constant 0.000000e+00 : f32
    %7 = vector.broadcast %cst_6 : f32 to vector<128x128xf32>
    %8 = arith.maximumf %6, %7 : vector<128x128xf32>
    %9 = arith.truncf %8 : vector<128x128xf32> to vector<128x128xbf16>
    %c0_7 = arith.constant 0 : index
    %c0_8 = arith.constant 0 : index
    %c0_9 = arith.constant 0 : index
    %10 = vector.load %arg4[%c0_7, %c0_8, %c0_9] : memref<1x128x128xbf16, #tpu.memory_space<vmem>>, vector<1x128x128xbf16>
    %11 = vector.shape_cast %10 : vector<1x128x128xbf16> to vector<128x128xbf16>
    %12 = vector.shape_cast %9 : vector<128x128xbf16> to vector<1x128x128xbf16>
    tpu.vector_store %arg4[%c0_7, %c0_8, %c0_9], %12 {strides = array<i32>} : memref<1x128x128xbf16, #tpu.memory_space<vmem>>, vector<1x128x128xbf16>,
    return
  }
  func.func @transform_0(%arg0: i32) -> (i32, i32, i32) {
    %c0_i32 = arith.constant 0 : i32
    %c0_i32_0 = arith.constant 0 : i32
    %c0_i32_1 = arith.constant 0 : i32
    return %arg0, %c0_i32, %c0_i32_0 : i32, i32, i32
  }
  func.func @transform_1(%arg0: i32) -> (i32, i32) {
    %c0_i32 = arith.constant 0 : i32
    %c0_i32_0 = arith.constant 0 : i32
    %c0_i32_1 = arith.constant 0 : i32
    return %c0_i32, %c0_i32_0 : i32, i32
  }
  func.func @transform_2(%arg0: i32) -> (i32, i32) {
    %c0_i32 = arith.constant 0 : i32
    %c0_i32_0 = arith.constant 0 : i32
    %c0_i32_1 = arith.constant 0 : i32
    return %c0_i32, %c0_i32_0 : i32, i32
  }
  func.func @transform_3(%arg0: i32) -> (i32, i32, i32) {
    %c0_i32 = arith.constant 0 : i32
    %c0_i32_0 = arith.constant 0 : i32
    %c0_i32_1 = arith.constant 0 : i32
    return %arg0, %c0_i32, %c0_i32_0 : i32, i32, i32
  }
}

module attributes {stable_mosaic.version = 11 : i64} {
  func.func @_conv3x3s2_kernel(%arg0: i32, %arg1: memref<1x64x72xbf16, #tpu.memory_space<vmem>>, %arg2: memref<72x128xbf16, #tpu.memory_space<vmem>>, %arg3: memref<1x128xf32, #tpu.memory_space<vmem>>, %arg4: memref<1x64x128xbf16, #tpu.memory_space<vmem>>) attributes {dimension_semantics = [#tpu.dimension_semantics<parallel>], iteration_bounds = array<i64: 2>, scalar_prefetch = 0 : i64, scratch_operands = 0 : i64, tpu.core_type = #tpu.core_type<tc>, window_params = [{transform_indices = @transform_0, window_bounds = array<i64: 1, 64, 72>}, {pipeline_mode = #tpu.pipeline_mode<synchronous>, transform_indices = @transform_1, window_bounds = array<i64: 72, 128>}, {pipeline_mode = #tpu.pipeline_mode<synchronous>, transform_indices = @transform_2, window_bounds = array<i64: 1, 128>}, {transform_indices = @transform_3, window_bounds = array<i64: 1, 64, 128>}]} {
    %c0 = arith.constant 0 : index
    %c0_0 = arith.constant 0 : index
    %c0_1 = arith.constant 0 : index
    %0 = vector.load %arg1[%c0, %c0_0, %c0_1] : memref<1x64x72xbf16, #tpu.memory_space<vmem>>, vector<1x64x72xbf16>
    %1 = vector.shape_cast %0 : vector<1x64x72xbf16> to vector<64x72xbf16>
    %c0_2 = arith.constant 0 : index
    %c0_3 = arith.constant 0 : index
    %2 = vector.load %arg2[%c0_2, %c0_3] : memref<72x128xbf16, #tpu.memory_space<vmem>>, vector<72x128xbf16>
    %cst = arith.constant dense<0.000000e+00> : vector<64x128xf32>
    %3 = tpu.matmul %1, %2, %cst {dimension_numbers = #tpu.dot_dimension_numbers<[1], [0], [0], [1], [0, 0, 1, 1], [], []>} : vector<64x72xbf16>, vector<72x128xbf16>, vector<64x128xf32> -> vector<64x128xf32>
    %c0_4 = arith.constant 0 : index
    %c0_5 = arith.constant 0 : index
    %4 = vector.load %arg3[%c0_4, %c0_5] : memref<1x128xf32, #tpu.memory_space<vmem>>, vector<1x128xf32>
    %5 = vector.broadcast %4 : vector<1x128xf32> to vector<64x128xf32>
    %6 = arith.addf %3, %5 : vector<64x128xf32>
    %cst_6 = arith.constant 0.000000e+00 : f32
    %7 = vector.broadcast %cst_6 : f32 to vector<64x128xf32>
    %8 = arith.maximumf %6, %7 : vector<64x128xf32>
    %9 = arith.truncf %8 : vector<64x128xf32> to vector<64x128xbf16>
    %c0_7 = arith.constant 0 : index
    %c0_8 = arith.constant 0 : index
    %c0_9 = arith.constant 0 : index
    %10 = vector.load %arg4[%c0_7, %c0_8, %c0_9] : memref<1x64x128xbf16, #tpu.memory_space<vmem>>, vector<1x64x128xbf16>
    %11 = vector.shape_cast %10 : vector<1x64x128xbf16> to vector<64x128xbf16>
    %12 = vector.shape_cast %9 : vector<64x128xbf16> to vector<1x64x128xbf16>
    tpu.vector_store %arg4[%c0_7, %c0_8, %c0_9], %12 {strides = array<i32>} : memref<1x64x128xbf16, #tpu.memory_space<vmem>>, vector<1x64x128xbf16>,
    return
  }
  func.func @transform_0(%arg0: i32) -> (i32, i32, i32) {
    %c0_i32 = arith.constant 0 : i32
    %c0_i32_0 = arith.constant 0 : i32
    %c0_i32_1 = arith.constant 0 : i32
    return %arg0, %c0_i32, %c0_i32_0 : i32, i32, i32
  }
  func.func @transform_1(%arg0: i32) -> (i32, i32) {
    %c0_i32 = arith.constant 0 : i32
    %c0_i32_0 = arith.constant 0 : i32
    %c0_i32_1 = arith.constant 0 : i32
    return %c0_i32, %c0_i32_0 : i32, i32
  }
  func.func @transform_2(%arg0: i32) -> (i32, i32) {
    %c0_i32 = arith.constant 0 : i32
    %c0_i32_0 = arith.constant 0 : i32
    %c0_i32_1 = arith.constant 0 : i32
    return %c0_i32, %c0_i32_0 : i32, i32
  }
  func.func @transform_3(%arg0: i32) -> (i32, i32, i32) {
    %c0_i32 = arith.constant 0 : i32
    %c0_i32_0 = arith.constant 0 : i32
    %c0_i32_1 = arith.constant 0 : i32
    return %arg0, %c0_i32, %c0_i32_0 : i32, i32, i32
  }
}

</mosaic_0001>

<bundles_post_ra>
// kernel: _lambda_.2
= control target key start
LH: loop header
LB: loop body
LE: loop exit
PB: predicated region body
PF: predicated region fallthrough
CT: control target
= control target key end

     0   :  { %s732_s12 = smov 0   ;;  %s786_s0 = inlined_call_operand.vmem [shape: bf16[2,128,36], index: 0, kind: input, shape index: {}]   ;;  %s787_s1 = inlined_call_operand.vmem [shape: bf16[36,128], index: 1, kind: input, shape index: {}]   ;;  %s788_s2 = inlined_call_operand.vmem [shape: f32[1,128], index: 2, kind: input, shape index: {}]   ;;  %s789_s3 = inlined_call_operand.vmem [shape: bf16[2,128,128], index: 3, kind: output, shape index: {}]  }
   0x1 LB: > { %s532_s13 = sadd.s32 4294967295, %s710_s12   ;;  %p536_p0 = scmp.ge.s32.totalorder %s710_s12, 1  ;;  %s710_s12 = sphi %s732_s12, %s13_s12  }
   0x2   : > { %p137_p1 = scmp.lt.s32.totalorder %s710_s12, 3 }
   0x4   : > { %p138_p2 = pnand %p536_p0, %p137_p1 }
   0x5   : > { %v693_v0 = vld [vmem:[%s787_s1] sm:$0xff] (!%p138_p2)   ;;  %v694_v1 = vld [vmem:[%s787_s1 + $0x8] sm:$0xff] (!%p138_p2)   ;;  %p161_p3 = scmp.lt.s32.totalorder (!%p138_p2), %s532_s13, 1  ;;  %v695_v2 = vld [vmem:[%s787_s1 + $0x10] ss:$0 sps:$4 sm:$0x33] (!%p138_p2)  }
   0x6   : > { %141 = sbr.rel (%p138_p2) target bundleno = 249 (0xf9), region = 32  ;;  %655 = vmatprep.subr.bf16.mxu0 (!%p138_p2), %v693_v0  ;;  %677 = vmatprep.subr.bf16.mxu1 (!%p138_p2), %v693_v0  ;;  %vm280_vm0 = vcmask (!%p138_p2), 1041408   ;;  %vm255_vm1 = vcmask (!%p138_p2), 293888   ;;  %v541_v12 = vld [vmem:[%s788_s2] ss:$0 sm:$0xff] (!%p138_p2) }
   0x7   : > { %656 = vmatpush3.bf16.msra.mxu0 (!%p138_p2), %v693_v0  ;;  %680 = vmatpush3.bf16.msra.mxu1 (!%p138_p2), %v693_v0  ;;  %v282_v4 = vsel (!%p138_p2), %vm280_vm0, %v695_v2, 0 }
   0x8   : > { %657 = vmatprep.subr.bf16.mxu0 (!%p138_p2), %v694_v1  ;;  %678 = vmatprep.subr.bf16.mxu1 (!%p138_p2), %v694_v1 }
   0xb   : > { %658 = vmatpush3.bf16.msra.mxu0 (!%p138_p2), %v694_v1  ;;  %681 = vmatpush3.bf16.msra.mxu1 (!%p138_p2), %v694_v1 }
   0xc   : > { %683 = vmatprep.subr.msk.bf16.mxu0 (!%p138_p2), %vm280_vm0, %v695_v2  ;;  %684 = vmatprep.subr.msk.bf16.mxu1 (!%p138_p2), %vm280_vm0, %v695_v2 }
   0xd   : > { %s791_s13 = smov (!%p161_p3, %s532_s13), 1 }
   0xe   : > { %s579_s20 = sshll.u32 %s791_s13, 6 }
   0xf   : > { %s165_s23 = scalar_lea.vmem %s786_s0, %s579_s20  ;;  %660 = vmatpush3.bf16.msra.mxu0 %v282_v4  ;;  %682 = vmatpush3.bf16.msra.mxu1 %v282_v4  ;;  %s773_s28 = scalar_lea.vmem %s789_s3, %s579_s20 }
  0x10   : > { %v696_v3 = vld [vmem:[%s165_s23] sm:$0xff]   ;;  %v698_v6 = vld [vmem:[%s165_s23 + $0x8] sm:$0xff]   ;;  %v700_v8 = vld [vmem:[%s165_s23 + $0x10] sm:$0xff]  }
  0x11   : > { %v697_v5 = vld [vmem:[%s165_s23 + $0x20] sm:$0xff]   ;;  %661 = vmatprep.mubr.msk.bf16.mxu0 %vm255_vm1, %v696_v3  ;;  %v699_v7 = vld [vmem:[%s165_s23 + $0x28] sm:$0xff]   ;;  %v701_v9 = vld [vmem:[%s165_s23 + $0x30] sm:$0xff]  }
  0x12   : > { %669 = vmatprep.mubr.msk.bf16.mxu1 %vm255_vm1, %v697_v5  ;;  %662 = vmatmul.mubr.msk.bf16.vlgmr.msra.gmra.mrb[0].mxu0 %vm255_vm1, %v698_v6  ;;  %v702_v10 = vld [vmem:[%s165_s23 + $0x18] sm:$0xff]  }
  0x13   : > { %670 = vmatmul.mubr.msk.bf16.vlgmr.msra.gmra.mrb[0].mxu1 %vm255_vm1, %v699_v7  ;;  %665 = vmatprep.mubr.msk.bf16.mxu0 %vm255_vm1, %v700_v8  ;;  %v703_v11 = vld [vmem:[%s165_s23 + $0x38] sm:$0xff]  }
  0x14   : > { %673 = vmatprep.mubr.msk.bf16.mxu1 %vm255_vm1, %v701_v9 }
  0x1a   : > { %666 = vmatmul.mubr.msk.bf16.gmra.mrb[4].mxu0 %vm255_vm1, %v702_v10 }
  0x1b   : > { %674 = vmatmul.mubr.msk.bf16.gmra.mrb[4].mxu1 %vm255_vm1, %v703_v11 }
  0xe5   : > { %v663_v13 = vpop.f32.mrb[0].mxu0 }
  0xe6   : > { %v671_v14 = vpop.f32.mrb[0].mxu1  ;;  %v327_v15 = vadd.f32 %v663_v13, %v541_v12  ;;  %v318_v17 = vpop.f32.mrb[1].mxu0 }
  0xe7   : > { %v359_v16 = vadd.f32 %v671_v14, %v541_v12  ;;  %v350_v18 = vpop.f32.mrb[1].mxu1  ;;  %v319_v19 = vadd.f32 %v541_v12, %v318_v17  ;;  %v664_v21 = vpop.f32.mrb[2].mxu0 }
  0xe8   : > { %v351_v20 = vadd.f32 %v541_v12, %v350_v18  ;;  %v672_v22 = vpop.f32.mrb[2].mxu1  ;;  %v330_v23 = vadd.f32 %v664_v21, %v541_v12  ;;  %v321_v25 = vpop.f32.mrb[3].mxu0  ;;  %v383_v29 = vmax.f32 %v327_v15, 0.0 }
  0xe9   : > { %v362_v24 = vadd.f32 %v672_v22, %v541_v12  ;;  %v353_v26 = vpop.f32.mrb[3].mxu1  ;;  %v322_v27 = vadd.f32 %v541_v12, %v321_v25  ;;  %v391_v30 = vmax.f32 %v359_v16, 0.0  ;;  %v381_v33 = vmax.f32 %v319_v19, 0.0 }
  0xea   : > { %v354_v28 = vadd.f32 %v541_v12, %v353_v26  ;;  %v384_v31 = vmax.f32 %v330_v23, 0.0  ;;  %v389_v34 = vmax.f32 %v351_v20, 0.0 }
  0xeb   : > { %v392_v32 = vmax.f32 %v362_v24, 0.0  ;;  %v382_v35 = vmax.f32 %v322_v27, 0.0 }
  0xec   : > { %v390_v36 = vmax.f32 %v354_v28, 0.0  ;;  %v605_v37 = vpack.c.bf16 %v384_v31, %v383_v29 }
  0xed   : > { %v625_v38 = vpack.c.bf16 %v392_v32, %v391_v30  ;;  %v600_v39 = vpack.c.bf16 %v382_v35, %v381_v33  ;;  %v667_v41 = vpop.f32.mrb[4].mxu0 }
  0xee   : > { %v620_v40 = vpack.c.bf16 %v390_v36, %v389_v34  ;;  %v675_v42 = vpop.f32.mrb[4].mxu1  ;;  %637 = vst [vmem:[%s773_s28 + $0x8] sm:$0xff] %v605_v37   ;;  %v343_v43 = vadd.f32 %v667_v41, %v541_v12  ;;  %v334_v45 = vpop.f32.mrb[5].mxu0 }
  0xef   : > { %641 = vst [vmem:[%s773_s28 + $0x28] sm:$0xff] %v625_v38   ;;  %v375_v44 = vadd.f32 %v675_v42, %v541_v12  ;;  %v366_v46 = vpop.f32.mrb[5].mxu1  ;;  %601 = vst [vmem:[%s773_s28] sm:$0xff] %v600_v39   ;;  %v335_v47 = vadd.f32 %v541_v12, %v334_v45  ;;  %v668_v49 = vpop.f32.mrb[6].mxu0 }
  0xf0   : > { %640 = vst [vmem:[%s773_s28 + $0x20] sm:$0xff] %v620_v40   ;;  %v367_v48 = vadd.f32 %v541_v12, %v366_v46  ;;  %v676_v50 = vpop.f32.mrb[6].mxu1  ;;  %v346_v51 = vadd.f32 %v668_v49, %v541_v12  ;;  %v337_v53 = vpop.f32.mrb[7].mxu0  ;;  %v387_v57 = vmax.f32 %v343_v43, 0.0 }
  0xf1   : > { %v378_v52 = vadd.f32 %v676_v50, %v541_v12  ;;  %v369_v54 = vpop.f32.mrb[7].mxu1  ;;  %v338_v55 = vadd.f32 %v541_v12, %v337_v53  ;;  %v395_v58 = vmax.f32 %v375_v44, 0.0  ;;  %v385_v61 = vmax.f32 %v335_v47, 0.0 }
  0xf2   : > { %v370_v56 = vadd.f32 %v541_v12, %v369_v54  ;;  %v388_v59 = vmax.f32 %v346_v51, 0.0  ;;  %v393_v62 = vmax.f32 %v367_v48, 0.0 }
  0xf3   : > { %v396_v60 = vmax.f32 %v378_v52, 0.0  ;;  %v386_v63 = vmax.f32 %v338_v55, 0.0 }
  0xf4   : > { %v394_v0 = vmax.f32 %v370_v56, 0.0  ;;  %v615_v1 = vpack.c.bf16 %v388_v59, %v387_v57 }
  0xf5   : > { %v635_v2 = vpack.c.bf16 %v396_v60, %v395_v58  ;;  %v610_v3 = vpack.c.bf16 %v386_v63, %v385_v61 }
  0xf6   : > { %v630_v4 = vpack.c.bf16 %v394_v0, %v393_v62  ;;  %639 = vst [vmem:[%s773_s28 + $0x18] sm:$0xff] %v615_v1  }
  0xf7   : > { %643 = vst [vmem:[%s773_s28 + $0x38] sm:$0xff] %v635_v2   ;;  %638 = vst [vmem:[%s773_s28 + $0x10] sm:$0xff] %v610_v3  }
  0xf8   : > { %642 = vst [vmem:[%s773_s28 + $0x30] sm:$0xff] %v630_v4  }
  0xf9 PF: > { %s13_s12 = sadd.s32 1, %s710_s12  }
  0xfa   : > { %p10_p4 = scmp.ge.s32.totalorder %s13_s12, 4  }
  0xfc   :  { %12 = sbr.rel (!%p10_p4) target bundleno = 1 (0x1), region = 62 }

// kernel: _lambda_.3
= control target key start
LH: loop header
LB: loop body
LE: loop exit
PB: predicated region body
PF: predicated region fallthrough
CT: control target
= control target key end

     0   :  { %s578_s12 = smov 0   ;;  %s624_s0 = inlined_call_operand.vmem [shape: bf16[2,64,72], index: 0, kind: input, shape index: {}]   ;;  %s625_s1 = inlined_call_operand.vmem [shape: bf16[72,128], index: 1, kind: input, shape index: {}]   ;;  %s626_s2 = inlined_call_operand.vmem [shape: f32[1,128], index: 2, kind: input, shape index: {}]   ;;  %s627_s3 = inlined_call_operand.vmem [shape: bf16[2,64,128], index: 3, kind: output, shape index: {}]  }
   0x1 LB: > { %s428_s13 = sadd.s32 4294967295, %s556_s12   ;;  %p432_p0 = scmp.ge.s32.totalorder %s556_s12, 1  ;;  %s556_s12 = sphi %s578_s12, %s13_s12  }
   0x2   : > { %p137_p1 = scmp.lt.s32.totalorder %s556_s12, 3 }
   0x4   : > { %p138_p2 = pnand %p432_p0, %p137_p1 }
   0x5   : > { %v541_v0 = vld [vmem:[%s625_s1] sm:$0xff] (!%p138_p2)   ;;  %v542_v1 = vld [vmem:[%s625_s1 + $0x8] sm:$0xff] (!%p138_p2)   ;;  %p161_p3 = scmp.lt.s32.totalorder (!%p138_p2), %s428_s13, 1  ;;  %v543_v2 = vld [vmem:[%s625_s1 + $0x10] sm:$0xff] (!%p138_p2)   ;;  %vm243_vm0 = vcmask (!%p138_p2), 588800   ;;  %vm256_vm1 = vcmask (!%p138_p2), 1043456  }
   0x6   : > { %141 = sbr.rel (%p138_p2) target bundleno = 248 (0xf8), region = 32  ;;  %503 = vmatprep.subr.bf16.mxu0 (!%p138_p2), %v541_v0  ;;  %521 = vmatprep.subr.bf16.mxu1 (!%p138_p2), %v541_v0  ;;  %v544_v3 = vld [vmem:[%s625_s1 + $0x18] sm:$0xff] (!%p138_p2)   ;;  %v545_v6 = vld [vmem:[%s625_s1 + $0x20] ss:$0 sps:$4 sm:$0xff] (!%p138_p2)  }
   0x7   : > { %504 = vmatpush3.bf16.msra.mxu0 (!%p138_p2), %v541_v0  ;;  %526 = vmatpush3.bf16.msra.mxu1 (!%p138_p2), %v541_v0  ;;  %v258_v7 = vsel (!%p138_p2), %vm256_vm1, %v545_v6, 0  ;;  %v437_v10 = vld [vmem:[%s626_s2] ss:$0 sm:$0xff] (!%p138_p2) }
   0x8   : > { %505 = vmatprep.subr.bf16.mxu0 (!%p138_p2), %v542_v1  ;;  %522 = vmatprep.subr.bf16.mxu1 (!%p138_p2), %v542_v1 }
   0xb   : > { %506 = vmatpush3.bf16.msra.mxu0 (!%p138_p2), %v542_v1  ;;  %527 = vmatpush3.bf16.msra.mxu1 (!%p138_p2), %v542_v1 }
   0xc   : > { %507 = vmatprep.subr.bf16.mxu0 (!%p138_p2), %v543_v2  ;;  %523 = vmatprep.subr.bf16.mxu1 (!%p138_p2), %v543_v2 }
   0xd   : > { %s629_s13 = smov (!%p161_p3, %s428_s13), 1 }
   0xe   : > { %s461_s20 = sshll.u32 %s629_s13, 5 }
   0xf   : > { %s165_s25 = scalar_lea.vmem %s624_s0, %s461_s20  ;;  %508 = vmatpush3.bf16.msra.mxu0 %v543_v2  ;;  %528 = vmatpush3.bf16.msra.mxu1 %v543_v2  ;;  %s170_s5 = scalar_lea.vmem %s627_s3, %s461_s20 }
  0x10   : > { %v546_v4 = vld [vmem:[%s165_s25] sm:$0xff]   ;;  %v547_v5 = vld [vmem:[%s165_s25 + $0x10] sm:$0xff]   ;;  %509 = vmatprep.subr.bf16.mxu0 %v544_v3  ;;  %524 = vmatprep.subr.bf16.mxu1 %v544_v3  ;;  %v548_v8 = vld [vmem:[%s165_s25 + $0x8] sm:$0xff]  }
  0x11   : > { %513 = vmatprep.mubr.msk.bf16.mxu0 %vm243_vm0, %v546_v4  ;;  %517 = vmatprep.mubr.msk.bf16.mxu1 %vm243_vm0, %v547_v5  ;;  %v549_v9 = vld [vmem:[%s165_s25 + $0x18] sm:$0xff]  }
  0x13   : > { %510 = vmatpush3.bf16.msra.mxu0 %v544_v3  ;;  %529 = vmatpush3.bf16.msra.mxu1 %v544_v3 }
  0x14   : > { %531 = vmatprep.subr.msk.bf16.mxu0 %vm256_vm1, %v545_v6  ;;  %532 = vmatprep.subr.msk.bf16.mxu1 %vm256_vm1, %v545_v6 }
  0x17   : > { %512 = vmatpush3.bf16.msra.mxu0 %v258_v7  ;;  %530 = vmatpush3.bf16.msra.mxu1 %v258_v7 }
  0x1a   : > { %514 = vmatmul.mubr.msk.bf16.vlgmr.msra.gmra.mrb[0].mxu0 %vm243_vm0, %v548_v8  ;;  %518 = vmatmul.mubr.msk.bf16.vlgmr.msra.gmra.mrb[0].mxu1 %vm243_vm0, %v549_v9 }
  0xed   : > { %v515_v11 = vpop.f32.mrb[0].mxu0  ;;  %v519_v12 = vpop.f32.mrb[0].mxu1 }
  0xee   : > { %v303_v13 = vadd.f32 %v515_v11, %v437_v10  ;;  %v319_v14 = vadd.f32 %v519_v12, %v437_v10  ;;  %v294_v15 = vpop.f32.mrb[1].mxu0  ;;  %v310_v16 = vpop.f32.mrb[1].mxu1 }
  0xef   : > { %v295_v17 = vadd.f32 %v437_v10, %v294_v15  ;;  %v311_v18 = vadd.f32 %v437_v10, %v310_v16  ;;  %v516_v19 = vpop.f32.mrb[2].mxu0  ;;  %v520_v20 = vpop.f32.mrb[2].mxu1 }
  0xf0   : > { %v306_v21 = vadd.f32 %v516_v19, %v437_v10  ;;  %v322_v22 = vadd.f32 %v520_v20, %v437_v10  ;;  %v297_v23 = vpop.f32.mrb[3].mxu0  ;;  %v313_v24 = vpop.f32.mrb[3].mxu1  ;;  %v327_v27 = vmax.f32 %v303_v13, 0.0  ;;  %v331_v28 = vmax.f32 %v319_v14, 0.0 }
  0xf1   : > { %v298_v25 = vadd.f32 %v437_v10, %v297_v23  ;;  %v314_v26 = vadd.f32 %v437_v10, %v313_v24  ;;  %v325_v31 = vmax.f32 %v295_v17, 0.0  ;;  %v329_v32 = vmax.f32 %v311_v18, 0.0 }
  0xf2   : > { %v328_v29 = vmax.f32 %v306_v21, 0.0  ;;  %v332_v30 = vmax.f32 %v322_v22, 0.0 }
  0xf3   : > { %v326_v33 = vmax.f32 %v298_v25, 0.0  ;;  %v330_v34 = vmax.f32 %v314_v26, 0.0 }
  0xf4   : > { %v479_v35 = vpack.c.bf16 %v328_v29, %v327_v27  ;;  %v489_v36 = vpack.c.bf16 %v332_v30, %v331_v28 }
  0xf5   : > { %v474_v37 = vpack.c.bf16 %v326_v33, %v325_v31  ;;  %v484_v38 = vpack.c.bf16 %v330_v34, %v329_v32 }
  0xf6   : > { %491 = vst [vmem:[%s170_s5 + $0x8] sm:$0xff] %v479_v35   ;;  %493 = vst [vmem:[%s170_s5 + $0x18] sm:$0xff] %v489_v36  }
  0xf7   : > { %475 = vst [vmem:[%s170_s5] sm:$0xff] %v474_v37   ;;  %492 = vst [vmem:[%s170_s5 + $0x10] sm:$0xff] %v484_v38  }
  0xf8 PF: > { %s13_s12 = sadd.s32 1, %s556_s12  }
  0xf9   : > { %p10_p4 = scmp.ge.s32.totalorder %s13_s12, 4  }
  0xfb   :  { %12 = sbr.rel (!%p10_p4) target bundleno = 1 (0x1), region = 62 }

</bundles_post_ra>
